<compile_context>
chip_gen: v6e
topology: v6e:2x2x1
jax: 0.10.0
libtpu: 0.0.40
codegen_flags: <defaults>
</compile_context>

<pallas_src>
import math

import jax
import jax.numpy as jnp
from jax.experimental import pallas as pl
from jax.experimental.pallas import tpu as pltpu

SCALE_VALUE = 1.0

_ROW_PACK = 32                       # sublane multiple covering f32/bf16/int8 packing
_MAX_BLOCK_BYTES = 4 * 1024 * 1024   # ~4 MiB per pipelined buffer
_LANE_CANDIDATES = (512, 256, 128)   # lane-dense widths, widest first


def inv_softplus(x):
    # log(expm1(x)) -- inverse of softplus, used for param init (glue, plain JAX)
    return jnp.log(jnp.expm1(x))


def _get_scale(scale_param, scale_mode):
    """Loop-invariant scalar transform, hoisted out of the kernel (plain JAX)."""
    p = scale_param.astype(jnp.float32)
    if scale_mode == "linear":
        return p
    if scale_mode == "softplus":
        return jax.nn.softplus(p)
    if scale_mode == "sigmoid":
        return jax.nn.sigmoid(p)
    raise NotImplementedError(scale_mode)


def init_scale_param(init_value=None, scale_mode="linear"):
    """Deterministic parameter init, mirroring the PyTorch module."""
    if init_value is None:
        init_value = SCALE_VALUE
    iv = jnp.asarray([init_value], dtype=jnp.float32)
    if scale_mode == "linear":
        return iv
    if scale_mode == "softplus":
        return inv_softplus(iv)
    if scale_mode == "sigmoid":
        return jnp.log(iv / (1.0 - iv))
    raise NotImplementedError(scale_mode)


def _scale_kernel(s_ref, x_ref, o_ref):
    # s_ref : (1,) already-transformed scale in SMEM (f32).
    # x_ref / o_ref : (block_rows, lanes) tiles in VMEM.
    # Single multiply in the output dtype -> no f32 round-trip for bf16 inputs.
    o_ref[...] = x_ref[...] * s_ref[0].astype(o_ref.dtype)


def _round_up(n, m):
    return ((n + m - 1) // m) * m


def scale_layer_forward(x, scale_param, scale_mode="linear"):
    """Pallas-backed forward: get_scale() * x, elementwise, any shape/dtype."""
    orig_shape = x.shape
    orig_dtype = x.dtype
    total = math.prod(orig_shape)
    itemsize = jnp.dtype(orig_dtype).itemsize

    # Adaptive lane width: widest of {512,256,128} that divides `total`.
    # Aligned shapes reshape for free (no copy); only ragged totals
    # (total % 128 != 0) pad, and only up to the next 128 multiple.
    lanes = None
    for cand in _LANE_CANDIDATES:
        if total % cand == 0:
            lanes = cand
            break

    flat = x.reshape(-1)
    if lanes is None:
        lanes = 128
        total_padded = _round_up(total, lanes)
        flat = jnp.pad(flat, (0, total_padded - total))
    else:
        total_padded = total
    rows = total_padded // lanes
    x2d = flat.reshape(rows, lanes)

    # ~4 MiB per buffer, rows a multiple of 32 sublanes.  (in + out) x 2-deep
    # double-buffering ~= 16 MiB; vmem_limit_bytes=32 MiB below keeps v5e's
    # 16 MiB scoped default from OOMing (physical VMEM: 128/128/64 MiB).
    max_block_rows = max(
        _ROW_PACK, (_MAX_BLOCK_BYTES // (lanes * itemsize)) // _ROW_PACK * _ROW_PACK
    )
    # Cap at ~half the rows so large inputs keep >= 2 grid steps and the
    # "parallel" grid axis can be sharded across both v7x TensorCores.
    half_rows = max(_ROW_PACK, _round_up(pl.cdiv(rows, 2), _ROW_PACK))
    block_rows = min(max_block_rows, half_rows)

    # Last block may be partial: block_shape stays (8,128)-divisible, so Pallas
    # masks the edge tile (a few vst.msk) instead of us padding the whole array.
    grid = (pl.cdiv(rows, block_rows),)

    s = _get_scale(scale_param, scale_mode)  # scalar transform hoisted out of the kernel

    out2d = pl.pallas_call(
        _scale_kernel,
        out_shape=jax.ShapeDtypeStruct((rows, lanes), orig_dtype),
        grid=grid,
        in_specs=[
            pl.BlockSpec(memory_space=pltpu.MemorySpace.SMEM),    # (1,) transformed scale
            pl.BlockSpec((block_rows, lanes), lambda i: (i, 0)),  # x tile
        ],
        out_specs=pl.BlockSpec((block_rows, lanes), lambda i: (i, 0)),
        compiler_params=pltpu.CompilerParams(
            dimension_semantics=("parallel",),  # megacore-shards the grid on v7x
            vmem_limit_bytes=32 << 20,
        ),
        cost_estimate=pl.CostEstimate(
            flops=total,
            transcendentals=0,
            bytes_accessed=2 * total * itemsize,
        ),
    )(s, x2d)

    out = out2d.reshape(-1)
    if total_padded != total:
        out = out[:total]
    return out.reshape(orig_shape)


def _reference(x, scale_param, scale_mode):
    s = _get_scale(scale_param, scale_mode)
    return x * s.astype(x.dtype)


if __name__ == "__main__":
    key = jax.random.PRNGKey(0)
    x = jax.random.normal(key, (2, 4, 16, 16), dtype=jnp.float32)  # NCHW

    configs = [
        ("linear", None),       # init_value defaults to SCALE_VALUE = 1.0
        ("softplus", 1.0),
        ("sigmoid", 0.5),
    ]

    ok = True
    for scale_mode, init_value in configs:
        p = init_scale_param(init_value, scale_mode)
        out = jax.block_until_ready(scale_layer_forward(x, p, scale_mode))
        ref = _reference(x, p, scale_mode)
        if not jnp.allclose(out, ref, atol=1e-5, rtol=1e-5):
            ok = False
            print(f"MISMATCH in mode {scale_mode}")

    # Ragged total (not a multiple of 128) exercises the 128-pad fallback path.
    x_ragged = jax.random.normal(jax.random.fold_in(key, 1), (3, 5, 7, 11),
                                 dtype=jnp.float32)
    p = init_scale_param(0.75, "softplus")
    out = jax.block_until_ready(scale_layer_forward(x_ragged, p, "softplus"))
    ref = _reference(x_ragged, p, "softplus")
    if not jnp.allclose(out, ref, atol=1e-5, rtol=1e-5):
        ok = False
        print("MISMATCH on ragged shape")

    # 128-aligned but row count not a block multiple: multi-step grid with a
    # masked final tile (no host-side padding / slicing).
    x_mid = jax.random.normal(jax.random.fold_in(key, 3), (2, 3, 40, 128),
                              dtype=jnp.float32)
    p = init_scale_param(1.25, "linear")
    out = jax.block_until_ready(scale_layer_forward(x_mid, p, "linear"))
    ref = _reference(x_mid, p, "linear")
    if not jnp.allclose(out, ref, atol=1e-5, rtol=1e-5):
        ok = False
        print("MISMATCH on masked-tail shape")

    # bf16 path: multiply stays in bf16 (no f32 round trip).
    x_bf16 = jax.random.normal(jax.random.fold_in(key, 2), (4, 8, 16, 16),
                               dtype=jnp.bfloat16)
    p = init_scale_param(0.5, "sigmoid")
    out = jax.block_until_ready(scale_layer_forward(x_bf16, p, "sigmoid"))
    ref = _reference(x_bf16, p, "sigmoid")
    if not jnp.allclose(out.astype(jnp.float32), ref.astype(jnp.float32),
                        atol=2e-2, rtol=2e-2):
        ok = False
        print("MISMATCH on bf16 input")

    if ok:
        print("KERNEL_OK")
</pallas_src>

<mosaic_0001>
module attributes {stable_mosaic.version = 11 : i64} {
  func.func @_scale_kernel(%arg0: i32, %arg1: memref<1xf32, #tpu.memory_space<smem>>, %arg2: memref<32x512xf32, #tpu.memory_space<vmem>>, %arg3: memref<32x512xf32, #tpu.memory_space<vmem>>) attributes {dimension_semantics = [#tpu.dimension_semantics<parallel>], iteration_bounds = array<i64: 1>, scalar_prefetch = 0 : i64, scratch_operands = 0 : i64, tpu.core_type = #tpu.core_type<tc>, window_params = [{transform_indices = @transform_0, window_bounds = array<i64: 1>}, {transform_indices = @transform_1, window_bounds = array<i64: 32, 512>}, {transform_indices = @transform_2, window_bounds = array<i64: 32, 512>}]} {
    %c0 = arith.constant 0 : index
    %c0_0 = arith.constant 0 : index
    %0 = vector.load %arg2[%c0, %c0_0] : memref<32x512xf32, #tpu.memory_space<vmem>>, vector<32x512xf32>
    %c0_1 = arith.constant 0 : index
    %1 = memref.load %arg1[%c0_1] : memref<1xf32, #tpu.memory_space<smem>>
    %2 = vector.broadcast %1 : f32 to vector<32x512xf32>
    %3 = arith.mulf %0, %2 : vector<32x512xf32>
    %c0_2 = arith.constant 0 : index
    %c0_3 = arith.constant 0 : index
    %4 = vector.load %arg3[%c0_2, %c0_3] : memref<32x512xf32, #tpu.memory_space<vmem>>, vector<32x512xf32>
    tpu.vector_store %arg3[%c0_2, %c0_3], %3 {strides = array<i32>} : memref<32x512xf32, #tpu.memory_space<vmem>>, vector<32x512xf32>,
    return
  }
  func.func @transform_0(%arg0: i32) -> i32 {
    %c0_i32 = arith.constant 0 : i32
    %c0_i32_0 = arith.constant 0 : i32
    return %c0_i32 : i32
  }
  func.func @transform_1(%arg0: i32) -> (i32, i32) {
    %c0_i32 = arith.constant 0 : i32
    %c0_i32_0 = arith.constant 0 : i32
    return %arg0, %c0_i32 : i32, i32
  }
  func.func @transform_2(%arg0: i32) -> (i32, i32) {
    %c0_i32 = arith.constant 0 : i32
    %c0_i32_0 = arith.constant 0 : i32
    return %arg0, %c0_i32 : i32, i32
  }
}

</mosaic_0001>

<bundles_post_ra>
// kernel: tpu_custom_call.1
= control target key start
LH: loop header
LB: loop body
LE: loop exit
PB: predicated region body
PF: predicated region fallthrough
CT: control target
= control target key end

     0   :  { %8 = vsyncpa [#allocation4], 0  ;;  %s176_s0 = inlined_call_operand.<no memory space> [shape: f32[1], index: 0, kind: input, shape index: {}]   ;;  %s177_s1 = inlined_call_operand.hbm [shape: f32[4,512], index: 1, kind: input, shape index: {}]   ;;  %s178_s2 = inlined_call_operand.hbm [shape: f32[4,512], index: 2, kind: output, shape index: {}]  }
   0x1   :  { %9 = vsyncpa [#allocation5], 0 }
   0x2   :  { %16 = vsyncadd [#allocation4], 1792  ;;  %s142_s9 = smov [#allocation3]  }
   0x3   :  { %s17_s10 = sshll.u32 %s142_s9, 4  ;;  %s18_s10 = int_to_ptr.vmem [resolvable:$true] %s17_s10 }
   0x4   :  { %s106_s11 = scalar_lea.vmem %s18_s10, 256  ;;  %s110_s12 = scalar_lea.vmem %s18_s10, 2048 }
   0x5   :  { %p107_p0 = scmp.ne.s32.totalorder %s18_s10, %s106_s11  ;;  %p111_p1 = scmp.lt.s32.totalorder %s18_s10, %s18_s10 }
   0x6   :  { %p112_p2 = scmp.lt.s32.totalorder %s110_s12, %s106_s11 }
   0x8   :  { %p113_p3 = por %p112_p2, %p111_p1 }
   0xa   :  { %p114_p4 = pnand %p113_p3, %p107_p0 }
   0xc   :  { %117 = shalt.err (!%p114_p4)
}
   0xd   :  { %s143_s13 = smov 256   ;;  %s144_s14 = smov 16  }
   0xe   :  { %23 = dma.hbm_to_vmem [thread:$0]  %s177_s1, 256, %s18_s10, [#allocation4], %s143_s13, %s143_s13, %s144_s14  }
   0xf   :  { %138 = dma.done.wait [#allocation4], 2048  }
  0x10   :  { %139 = vsyncadd [#allocation4], 4294965248  ;;  %v44_v0 = vstv %s176_s0  ;;  %v27_v1 = vld [vmem:[#allocation3] sm:$0xff]  ;;  %v28_v2 = vld [vmem:[#allocation3 + $0x8] sm:$0xff] }
  0x11   :  { %v29_v3 = vld [vmem:[#allocation3 + $0x10] sm:$0xff]  ;;  %v45_v4 = vmul.f32 %v44_v0, %v27_v1  ;;  %v46_v5 = vmul.f32 %v44_v0, %v28_v2  ;;  %v30_v7 = vld [vmem:[#allocation3 + $0x18] sm:$0xff]  ;;  %v31_v8 = vld [vmem:[#allocation3 + $0x20] sm:$0xff] }
  0x12   :  { %v47_v6 = vmul.f32 %v44_v0, %v29_v3  ;;  %v32_v9 = vld [vmem:[#allocation3 + $0x28] sm:$0xff]  ;;  %v48_v10 = vmul.f32 %v44_v0, %v30_v7  ;;  %v49_v11 = vmul.f32 %v44_v0, %v31_v8  ;;  %v33_v13 = vld [vmem:[#allocation3 + $0x30] sm:$0xff]  ;;  %v34_v14 = vld [vmem:[#allocation3 + $0x38] sm:$0xff] }
  0x13   :  { %v50_v12 = vmul.f32 %v44_v0, %v32_v9  ;;  %v35_v15 = vld [vmem:[#allocation3 + $0x40] sm:$0xff]  ;;  %61 = vst [vmem:[#allocation6] sm:$0xff] %v45_v4  ;;  %62 = vst [vmem:[#allocation6 + $0x8] sm:$0xff] %v46_v5  ;;  %v51_v16 = vmul.f32 %v44_v0, %v33_v13  ;;  %v52_v17 = vmul.f32 %v44_v0, %v34_v14  ;;  %v36_v19 = vld [vmem:[#allocation3 + $0x48] sm:$0xff] }
  0x14   :  { %63 = vst [vmem:[#allocation6 + $0x10] sm:$0xff] %v47_v6  ;;  %v53_v18 = vmul.f32 %v44_v0, %v35_v15  ;;  %v37_v20 = vld [vmem:[#allocation3 + $0x50] sm:$0xff]  ;;  %v38_v21 = vld [vmem:[#allocation3 + $0x58] sm:$0xff]  ;;  %64 = vst [vmem:[#allocation6 + $0x18] sm:$0xff] %v48_v10  ;;  %v54_v22 = vmul.f32 %v44_v0, %v36_v19 }
  0x15   :  { %65 = vst [vmem:[#allocation6 + $0x20] sm:$0xff] %v49_v11  ;;  %66 = vst [vmem:[#allocation6 + $0x28] sm:$0xff] %v50_v12  ;;  %v55_v23 = vmul.f32 %v44_v0, %v37_v20  ;;  %v56_v24 = vmul.f32 %v44_v0, %v38_v21  ;;  %v39_v25 = vld [vmem:[#allocation3 + $0x60] sm:$0xff]  ;;  %v40_v26 = vld [vmem:[#allocation3 + $0x68] sm:$0xff] }
  0x16   :  { %v41_v27 = vld [vmem:[#allocation3 + $0x70] sm:$0xff]  ;;  %67 = vst [vmem:[#allocation6 + $0x30] sm:$0xff] %v51_v16  ;;  %68 = vst [vmem:[#allocation6 + $0x38] sm:$0xff] %v52_v17  ;;  %v57_v28 = vmul.f32 %v44_v0, %v39_v25  ;;  %v58_v29 = vmul.f32 %v44_v0, %v40_v26  ;;  %v42_v31 = vld [vmem:[#allocation3 + $0x78] sm:$0xff] }
  0x17   :  { %69 = vst [vmem:[#allocation6 + $0x40] sm:$0xff] %v53_v18  ;;  %v59_v30 = vmul.f32 %v44_v0, %v41_v27  ;;  %70 = vst [vmem:[#allocation6 + $0x48] sm:$0xff] %v54_v22  ;;  %v60_v32 = vmul.f32 %v44_v0, %v42_v31 }
  0x18   :  { %71 = vst [vmem:[#allocation6 + $0x50] sm:$0xff] %v55_v23  ;;  %72 = vst [vmem:[#allocation6 + $0x58] sm:$0xff] %v56_v24 }
  0x19   :  { %73 = vst [vmem:[#allocation6 + $0x60] sm:$0xff] %v57_v28  ;;  %74 = vst [vmem:[#allocation6 + $0x68] sm:$0xff] %v58_v29 }
  0x1a   :  { %75 = vst [vmem:[#allocation6 + $0x70] sm:$0xff] %v59_v30  ;;  %76 = vst [vmem:[#allocation6 + $0x78] sm:$0xff] %v60_v32 }
  0x1b   :  { %81 = vsyncadd [#allocation5], 1792  ;;  %s145_s0 = smov [#allocation6]  }
  0x1c   :  { %s82_s1 = sshll.u32 %s145_s0, 4  ;;  %s83_s1 = int_to_ptr.vmem [resolvable:$true] %s82_s1 }
  0x1d   :  { %s118_s19 = scalar_lea.vmem %s83_s1, 256  ;;  %s122_s20 = scalar_lea.vmem %s83_s1, 2048 }
  0x1e   :  { %p119_p5 = scmp.ne.s32.totalorder %s83_s1, %s118_s19  ;;  %p123_p6 = scmp.lt.s32.totalorder %s83_s1, %s83_s1 }
  0x1f   :  { %p124_p7 = scmp.lt.s32.totalorder %s122_s20, %s118_s19 }
  0x21   :  { %p125_p8 = por %p124_p7, %p123_p6 }
  0x23   :  { %p126_p9 = pnand %p125_p8, %p119_p5 }
  0x25   :  { %129 = shalt.err (!%p126_p9)
}
  0x26   :  { %88 = dma.vmem_to_hbm [thread:$0]  %s83_s1, 256, %s178_s2, [#allocation5], %s143_s13, %s143_s13, %s144_s14  }
  0x27   :  { %140 = dma.done.wait [#allocation5], 2048  }
  0x28   :  { %141 = vsyncadd [#allocation5], 4294965248 }
  0x29   :  { %92 = vsyncpa [#allocation4], 1 }
  0x2a   :  { %93 = vsyncpa [#allocation5], 1 }

</bundles_post_ra>
